<compile_context>
chip_gen: v5e
topology: v5e:2x2
jax: 0.10.0
libtpu: 0.0.40
codegen_flags: <defaults>
</compile_context>

<pallas_src>
import jax
import jax.numpy as jnp
from jax.experimental import pallas as pl
from jax.experimental.pallas import tpu as pltpu


def _upsample_conv_kernel(body_ref, halo_ref, w_ref, b_ref, o_ref):
    """Fused nearest-2x upsample + 3x3 conv via parity decomposition.

    body_ref: (1, TH, W+2, Cin)      rows [r*TH, (r+1)*TH) of the zero-padded input
    halo_ref: (1, 2, W+2, Cin)       rows [(r+1)*TH, (r+1)*TH + 2) (bottom halo)
    w_ref   : (4, 4*Cin, Cout)       parity-packed weights, K = (dh*2+dw)*Cin + ci
    b_ref   : (1, Cout)              bias (f32)
    o_ref   : (1, TH, 4, W, Cout)    parity-major output, parity = ri*2 + rj
    """
    TH = body_ref.shape[1]
    W = body_ref.shape[2] - 2
    Cin = body_ref.shape[3]
    Cout = b_ref.shape[1]

    body = body_ref[0]         # (TH, W+2, Cin)
    halo = halo_ref[0]         # (2,  W+2, Cin)

    # 3 column-shifted (TH+2)-row windows, built once per tile (the only
    # sublane-offset copies); every row offset below is a free leading-axis slice.
    xc = [jnp.concatenate([body[:, c:c + W, :], halo[:, c:c + W, :]], axis=0)
          for c in range(3)]   # each (TH+2, W, Cin)

    # Bias hoisted once (broadcast is not CSE'd by JAX), accumulation in f32.
    bias = jnp.broadcast_to(b_ref[...].astype(jnp.float32), (TH * W, Cout))

    for ri in range(2):
        for rj in range(2):
            par = ri * 2 + rj
            # K-pack the 4 contributing taps along the contraction axis in the order
            # (dh, dw) = (0,0), (0,1), (1,0), (1,1) to match w_ref's K layout.
            pieces = [xc[rj + dw][ri + dh:ri + dh + TH]
                      for dh in range(2) for dw in range(2)]
            lhs = jnp.concatenate(pieces, axis=-1).reshape(TH * W, 4 * Cin)
            res = jnp.dot(lhs, w_ref[par],
                          preferred_element_type=jnp.float32) + bias
            # Full (W, Cout) lane-dense slab store for each parity (never masked by a
            # lane offset, even when Cout % 128 != 0).
            o_ref[0, :, par, :, :] = res.reshape(TH, W, Cout).astype(o_ref.dtype)


def _vmem_capacity_bytes():
    try:
        return int(pltpu.get_tpu_info().vmem_capacity_bytes)
    except Exception:
        return 64 * 1024 * 1024        # conservative (v7x-sized) fallback


def _estimate_vmem_bytes(th, W, Cin, Cout, in_item):
    """Rough VMEM footprint for one row tile: double-buffered pipeline operands plus
    single-buffered in-kernel temporaries."""
    body = th * (W + 2) * Cin * in_item
    halo = 2 * (W + 2) * Cin * in_item
    out = 4 * th * W * Cout * in_item
    wts = 4 * 4 * Cin * Cout * in_item
    bias = Cout * 4
    pipelined = 2 * (body + halo + out + wts + bias)           # double buffering
    temps = (3 * (th + 2) * W * Cin * in_item                  # column-shifted windows
             + 2 * 4 * th * W * Cin * in_item                  # live K-packed operands
             + 2 * th * W * Cout * 4)                          # live f32 results
    return pipelined + temps


def _choose_tiling(H, W, Cin, Cout, in_item, budget_bytes, row_tile=None):
    """Pick (row_tile, h_pad): the largest tile fitting the VMEM budget, preferring an
    exact divisor of H; otherwise pad H up (never collapse to row_tile=1)."""
    if row_tile is None:
        row_tile = 1
        for th in range(1, min(H, 512) + 1):
            if _estimate_vmem_bytes(th, W, Cin, Cout, in_item) <= budget_bytes:
                row_tile = th
        for th in range(row_tile, 0, -1):     # prefer a divisor within 2x of optimum
            if H % th == 0 and 2 * th > row_tile:
                return th, H
    h_pad = pl.cdiv(H, row_tile) * row_tile
    return row_tile, h_pad


def upsample_forward(x_nchw, weight, bias, *, row_tile=None, compute_dtype=None,
                     vmem_limit_bytes=None):
    """Upsample(2x nearest) -> Conv2d(Cin, Cout, 3, padding=1); NCHW in / NCHW out.

    x_nchw : (N, Cin, H, W)
    weight : (Cout, Cin, 3, 3)  (PyTorch OIHW layout)
    bias   : (Cout,)
    compute_dtype: dtype for activations/weights inside the kernel (pass jnp.bfloat16
        for production channel counts); accumulation is always f32.
    returns: (N, Cout, 2H, 2W) in x_nchw.dtype
    """
    N, Cin, H, W = x_nchw.shape
    Cout = weight.shape[0]
    out_dtype = x_nchw.dtype
    cdt = jnp.dtype(compute_dtype) if compute_dtype is not None else jnp.dtype(out_dtype)

    if vmem_limit_bytes is None:
        vmem_limit_bytes = min(_vmem_capacity_bytes() * 3 // 4, 96 * 1024 * 1024)
    row_tile, h_pad = _choose_tiling(H, W, Cin, Cout, cdt.itemsize,
                                     int(vmem_limit_bytes * 0.9), row_tile)
    R = h_pad // row_tile

    # NCHW -> NHWC on the small pre-upsample tensor (after the optional down-cast);
    # zero-pad: 1-row/col conv halo plus (h_pad - H) extra bottom rows so the row grid
    # divides evenly (ragged-H handling without a row_tile=1 cliff).
    x = jnp.transpose(x_nchw.astype(cdt), (0, 2, 3, 1))             # (N, H, W, Cin)
    xp = jnp.pad(x, ((0, 0), (1, 1 + h_pad - H), (1, 1), (0, 0)))   # (N, h_pad+2, W+2, Cin)

    # Tiny bottom-halo array: 2 rows per row block.  The kernel stitches these onto its
    # non-overlapping body block, so no overlapping windows are materialized in HBM.
    halo_rows = (jnp.arange(R)[:, None] + 1) * row_tile + jnp.arange(2)[None, :]
    halo = jnp.take(xp, halo_rows.reshape(-1), axis=1)              # (N, 2R, W+2, Cin)
    halo = halo.reshape(N * R, 2, W + 2, Cin)

    # Pre-summed parity weights:
    #   out[2p+ri, 2q+rj] = b + sum_{dh,dw in {0,1}} xpad[p+ri+dh, q+rj+dw] @ w_eff
    # where w_eff[ri,rj,dh,dw] sums the original 3x3 taps that collapse onto the same
    # source pixel under nearest-neighbour 2x upsampling.  Packed to (4, 4*Cin, Cout)
    # with K = (dh*2 + dw)*Cin + ci, matching the kernel's patch-concat order.
    w_hw = jnp.transpose(weight, (2, 3, 1, 0)).astype(jnp.float32)      # (3,3,Cin,Cout)
    A = jnp.array([[[1., 0., 0.], [0., 1., 1.]],
                   [[1., 1., 0.], [0., 0., 1.]]], dtype=jnp.float32)    # [parity, d, tap]
    w_eff = jnp.einsum('aik,bjl,klcd->abijcd', A, A, w_hw)              # (2,2,2,2,Cin,Cout)
    w_packed = w_eff.reshape(4, 4 * Cin, Cout).astype(cdt)
    b = bias.reshape(1, Cout).astype(jnp.float32)

    out = pl.pallas_call(
        _upsample_conv_kernel,
        out_shape=jax.ShapeDtypeStruct((N, h_pad, 4, W, Cout), out_dtype),
        grid_spec=pltpu.PrefetchScalarGridSpec(
            num_scalar_prefetch=0,
            grid=(N, R),
            in_specs=[
                pl.BlockSpec((1, row_tile, W + 2, Cin), lambda n, r: (n, r, 0, 0)),
                pl.BlockSpec((1, 2, W + 2, Cin), lambda n, r: (n * R + r, 0, 0, 0)),
                pl.BlockSpec((4, 4 * Cin, Cout), lambda n, r: (0, 0, 0)),
                pl.BlockSpec((1, Cout), lambda n, r: (0, 0)),
            ],
            out_specs=pl.BlockSpec((1, row_tile, 4, W, Cout),
                                   lambda n, r: (n, r, 0, 0, 0)),
        ),
        compiler_params=pltpu.CompilerParams(
            dimension_semantics=("parallel", "parallel"),
            vmem_limit_bytes=int(vmem_limit_bytes)),
    )(xp, halo, w_packed, b)

    # (N, H, 2(ri), 2(rj), W, Cout) -> pixel shuffle + NCHW in a single transpose.
    # TODO(synk): an NHWC consumer could take a row/channel-interleaved kernel layout
    # and skip this transpose entirely.
    out = out[:, :H].reshape(N, H, 2, 2, W, Cout)
    out = jnp.transpose(out, (0, 5, 1, 2, 4, 3)).reshape(N, Cout, 2 * H, 2 * W)
    return out


def init_params(key, input_dim, output_dim):
    """Deterministic Conv2d(input_dim, output_dim, 3) init (PyTorch-style uniform)."""
    kw, kb = jax.random.split(key)
    fan_in = input_dim * 3 * 3
    bound = 1.0 / (fan_in ** 0.5)
    weight = jax.random.uniform(kw, (output_dim, input_dim, 3, 3),
                                minval=-bound, maxval=bound, dtype=jnp.float32)
    bias = jax.random.uniform(kb, (output_dim,),
                              minval=-bound, maxval=bound, dtype=jnp.float32)
    return weight, bias


if __name__ == "__main__":
    key = jax.random.PRNGKey(0)
    k_x, k_p = jax.random.split(key)

    N, Cin, H, W = 2, 4, 16, 16
    Cout = 8

    x = jax.random.normal(k_x, (N, Cin, H, W), dtype=jnp.float32)
    weight, bias = init_params(k_p, Cin, Cout)

    # pure-JAX reference: nearest 2x upsample + SAME 3x3 conv (== the PyTorch module)
    x_up = jnp.repeat(jnp.repeat(x, 2, axis=2), 2, axis=3)
    ref = jax.lax.conv_general_dilated(
        x_up, weight, window_strides=(1, 1), padding="SAME",
        dimension_numbers=("NCHW", "OIHW", "NCHW")) + bias[None, :, None, None]

    # multi-row-block grid + halo path (H=16 -> 2 row blocks of 8)
    out = upsample_forward(x, weight, bias, row_tile=8)
    jax.block_until_ready(out)
    assert out.shape == (N, Cout, 2 * H, 2 * W)
    assert jnp.allclose(out, ref, atol=1e-4, rtol=1e-4)

    # default auto-tiled path (single row block per image at this size)
    out2 = upsample_forward(x, weight, bias)
    jax.block_until_ready(out2)
    assert jnp.allclose(out2, ref, atol=1e-4, rtol=1e-4)

    # bf16 compute path (production setting): f32 accumulation, loose tolerance
    out3 = upsample_forward(x, weight, bias, row_tile=8, compute_dtype=jnp.bfloat16)
    jax.block_until_ready(out3)
    assert float(jnp.max(jnp.abs(out3 - ref))) < 0.1

    print("KERNEL_OK")
</pallas_src>

<mosaic_0001>
module attributes {stable_mosaic.version = 11 : i64} {
  func.func @_upsample_conv_kernel(%arg0: i32, %arg1: i32, %arg2: memref<1x8x18x4xf32, #tpu.memory_space<vmem>>, %arg3: memref<1x2x18x4xf32, #tpu.memory_space<vmem>>, %arg4: memref<4x16x8xf32, #tpu.memory_space<vmem>>, %arg5: memref<1x8xf32, #tpu.memory_space<vmem>>, %arg6: memref<1x8x4x16x8xf32, #tpu.memory_space<vmem>>) attributes {dimension_semantics = [#tpu.dimension_semantics<parallel>, #tpu.dimension_semantics<parallel>], iteration_bounds = array<i64: 2, 2>, scalar_prefetch = 0 : i64, scratch_operands = 0 : i64, tpu.core_type = #tpu.core_type<tc>, window_params = [{transform_indices = @transform_0, window_bounds = array<i64: 1, 8, 18, 4>}, {transform_indices = @transform_1, window_bounds = array<i64: 1, 2, 18, 4>}, {pipeline_mode = #tpu.pipeline_mode<synchronous>, transform_indices = @transform_2, window_bounds = array<i64: 4, 16, 8>}, {pipeline_mode = #tpu.pipeline_mode<synchronous>, transform_indices = @transform_3, window_bounds = array<i64: 1, 8>}, {transform_indices = @transform_4, window_bounds = array<i64: 1, 8, 4, 16, 8>}]} {
    %c0 = arith.constant 0 : index
    %c0_0 = arith.constant 0 : index
    %c0_1 = arith.constant 0 : index
    %c0_2 = arith.constant 0 : index
    %0 = vector.load %arg2[%c0, %c0_0, %c0_1, %c0_2] : memref<1x8x18x4xf32, #tpu.memory_space<vmem>>, vector<1x8x18x4xf32>
    %1 = vector.shape_cast %0 : vector<1x8x18x4xf32> to vector<8x18x4xf32>
    %c0_3 = arith.constant 0 : index
    %c0_4 = arith.constant 0 : index
    %c0_5 = arith.constant 0 : index
    %c0_6 = arith.constant 0 : index
    %2 = vector.load %arg3[%c0_3, %c0_4, %c0_5, %c0_6] : memref<1x2x18x4xf32, #tpu.memory_space<vmem>>, vector<1x2x18x4xf32>
    %3 = vector.shape_cast %2 : vector<1x2x18x4xf32> to vector<2x18x4xf32>
    %4 = vector.extract_strided_slice %1 {offsets = [0, 0, 0], sizes = [8, 16, 4], strides = [1, 1, 1]} : vector<8x18x4xf32> to vector<8x16x4xf32>
    %5 = vector.extract_strided_slice %3 {offsets = [0, 0, 0], sizes = [2, 16, 4], strides = [1, 1, 1]} : vector<2x18x4xf32> to vector<2x16x4xf32>
    %6 = tpu.concatenate %4, %5 in 0 : vector<8x16x4xf32>, vector<2x16x4xf32> -> vector<10x16x4xf32>
    %7 = vector.extract_strided_slice %1 {offsets = [0, 1, 0], sizes = [8, 16, 4], strides = [1, 1, 1]} : vector<8x18x4xf32> to vector<8x16x4xf32>
    %8 = vector.extract_strided_slice %3 {offsets = [0, 1, 0], sizes = [2, 16, 4], strides = [1, 1, 1]} : vector<2x18x4xf32> to vector<2x16x4xf32>
    %9 = tpu.concatenate %7, %8 in 0 : vector<8x16x4xf32>, vector<2x16x4xf32> -> vector<10x16x4xf32>
    %10 = vector.extract_strided_slice %1 {offsets = [0, 2, 0], sizes = [8, 16, 4], strides = [1, 1, 1]} : vector<8x18x4xf32> to vector<8x16x4xf32>
    %11 = vector.extract_strided_slice %3 {offsets = [0, 2, 0], sizes = [2, 16, 4], strides = [1, 1, 1]} : vector<2x18x4xf32> to vector<2x16x4xf32>
    %12 = tpu.concatenate %10, %11 in 0 : vector<8x16x4xf32>, vector<2x16x4xf32> -> vector<10x16x4xf32>
    %c0_7 = arith.constant 0 : index
    %c0_8 = arith.constant 0 : index
    %13 = vector.load %arg5[%c0_7, %c0_8] : memref<1x8xf32, #tpu.memory_space<vmem>>, vector<1x8xf32>
    %14 = vector.shape_cast %13 : vector<1x8xf32> to vector<1x8xf32>
    %15 = vector.broadcast %14 : vector<1x8xf32> to vector<128x8xf32>
    %16 = vector.extract_strided_slice %6 {offsets = [0, 0, 0], sizes = [8, 16, 4], strides = [1, 1, 1]} : vector<10x16x4xf32> to vector<8x16x4xf32>
    %17 = vector.extract_strided_slice %9 {offsets = [0, 0, 0], sizes = [8, 16, 4], strides = [1, 1, 1]} : vector<10x16x4xf32> to vector<8x16x4xf32>
    %18 = vector.extract_strided_slice %6 {offsets = [1, 0, 0], sizes = [8, 16, 4], strides = [1, 1, 1]} : vector<10x16x4xf32> to vector<8x16x4xf32>
    %19 = vector.extract_strided_slice %9 {offsets = [1, 0, 0], sizes = [8, 16, 4], strides = [1, 1, 1]} : vector<10x16x4xf32> to vector<8x16x4xf32>
    %20 = tpu.concatenate %16, %17, %18, %19 in 2 : vector<8x16x4xf32>, vector<8x16x4xf32>, vector<8x16x4xf32>, vector<8x16x4xf32> -> vector<8x16x16xf32>
    %21 = vector.shape_cast %20 : vector<8x16x16xf32> to vector<128x16xf32>
    %c0_9 = arith.constant 0 : index
    %c0_10 = arith.constant 0 : index
    %c0_11 = arith.constant 0 : index
    %22 = vector.load %arg4[%c0_9, %c0_10, %c0_11] : memref<4x16x8xf32, #tpu.memory_space<vmem>>, vector<1x16x8xf32>
    %23 = vector.shape_cast %22 : vector<1x16x8xf32> to vector<16x8xf32>
    %cst = arith.constant dense<0.000000e+00> : vector<128x8xf32>
    %24 = tpu.matmul %21, %23, %cst {dimension_numbers = #tpu.dot_dimension_numbers<[1], [0], [0], [1], [0, 0, 1, 1], [], []>} : vector<128x16xf32>, vector<16x8xf32>, vector<128x8xf32> -> vector<128x8xf32>
    %25 = arith.addf %24, %15 : vector<128x8xf32>
    %26 = vector.shape_cast %25 : vector<128x8xf32> to vector<8x16x8xf32>
    %c0_12 = arith.constant 0 : index
    %c0_13 = arith.constant 0 : index
    %c0_14 = arith.constant 0 : index
    %c0_15 = arith.constant 0 : index
    %c0_16 = arith.constant 0 : index
    %27 = vector.load %arg6[%c0_12, %c0_13, %c0_14, %c0_15, %c0_16] : memref<1x8x4x16x8xf32, #tpu.memory_space<vmem>>, vector<1x8x1x16x8xf32>
    %28 = vector.shape_cast %27 : vector<1x8x1x16x8xf32> to vector<8x16x8xf32>
    %29 = vector.shape_cast %26 : vector<8x16x8xf32> to vector<1x8x1x16x8xf32>
    tpu.vector_store %arg6[%c0_12, %c0_13, %c0_14, %c0_15, %c0_16], %29 {strides = array<i32>} : memref<1x8x4x16x8xf32, #tpu.memory_space<vmem>>, vector<1x8x1x16x8xf32>,
    %30 = vector.extract_strided_slice %9 {offsets = [0, 0, 0], sizes = [8, 16, 4], strides = [1, 1, 1]} : vector<10x16x4xf32> to vector<8x16x4xf32>
    %31 = vector.extract_strided_slice %12 {offsets = [0, 0, 0], sizes = [8, 16, 4], strides = [1, 1, 1]} : vector<10x16x4xf32> to vector<8x16x4xf32>
    %32 = vector.extract_strided_slice %9 {offsets = [1, 0, 0], sizes = [8, 16, 4], strides = [1, 1, 1]} : vector<10x16x4xf32> to vector<8x16x4xf32>
    %33 = vector.extract_strided_slice %12 {offsets = [1, 0, 0], sizes = [8, 16, 4], strides = [1, 1, 1]} : vector<10x16x4xf32> to vector<8x16x4xf32>
    %34 = tpu.concatenate %30, %31, %32, %33 in 2 : vector<8x16x4xf32>, vector<8x16x4xf32>, vector<8x16x4xf32>, vector<8x16x4xf32> -> vector<8x16x16xf32>
    %35 = vector.shape_cast %34 : vector<8x16x16xf32> to vector<128x16xf32>
    %c1 = arith.constant 1 : index
    %c0_17 = arith.constant 0 : index
    %c0_18 = arith.constant 0 : index
    %36 = vector.load %arg4[%c1, %c0_17, %c0_18] : memref<4x16x8xf32, #tpu.memory_space<vmem>>, vector<1x16x8xf32>
    %37 = vector.shape_cast %36 : vector<1x16x8xf32> to vector<16x8xf32>
    %cst_19 = arith.constant dense<0.000000e+00> : vector<128x8xf32>
    %38 = tpu.matmul %35, %37, %cst_19 {dimension_numbers = #tpu.dot_dimension_numbers<[1], [0], [0], [1], [0, 0, 1, 1], [], []>} : vector<128x16xf32>, vector<16x8xf32>, vector<128x8xf32> -> vector<128x8xf32>
    %39 = arith.addf %38, %15 : vector<128x8xf32>
    %40 = vector.shape_cast %39 : vector<128x8xf32> to vector<8x16x8xf32>
    %c0_20 = arith.constant 0 : index
    %c0_21 = arith.constant 0 : index
    %c1_22 = arith.constant 1 : index
    %c0_23 = arith.constant 0 : index
    %c0_24 = arith.constant 0 : index
    %41 = vector.load %arg6[%c0_20, %c0_21, %c1_22, %c0_23, %c0_24] : memref<1x8x4x16x8xf32, #tpu.memory_space<vmem>>, vector<1x8x1x16x8xf32>
    %42 = vector.shape_cast %41 : vector<1x8x1x16x8xf32> to vector<8x16x8xf32>
    %43 = vector.shape_cast %40 : vector<8x16x8xf32> to vector<1x8x1x16x8xf32>
    tpu.vector_store %arg6[%c0_20, %c0_21, %c1_22, %c0_23, %c0_24], %43 {strides = array<i32>} : memref<1x8x4x16x8xf32, #tpu.memory_space<vmem>>, vector<1x8x1x16x8xf32>,
    %44 = vector.extract_strided_slice %6 {offsets = [1, 0, 0], sizes = [8, 16, 4], strides = [1, 1, 1]} : vector<10x16x4xf32> to vector<8x16x4xf32>
    %45 = vector.extract_strided_slice %9 {offsets = [1, 0, 0], sizes = [8, 16, 4], strides = [1, 1, 1]} : vector<10x16x4xf32> to vector<8x16x4xf32>
    %46 = vector.extract_strided_slice %6 {offsets = [2, 0, 0], sizes = [8, 16, 4], strides = [1, 1, 1]} : vector<10x16x4xf32> to vector<8x16x4xf32>
    %47 = vector.extract_strided_slice %9 {offsets = [2, 0, 0], sizes = [8, 16, 4], strides = [1, 1, 1]} : vector<10x16x4xf32> to vector<8x16x4xf32>
    %48 = tpu.concatenate %44, %45, %46, %47 in 2 : vector<8x16x4xf32>, vector<8x16x4xf32>, vector<8x16x4xf32>, vector<8x16x4xf32> -> vector<8x16x16xf32>
    %49 = vector.shape_cast %48 : vector<8x16x16xf32> to vector<128x16xf32>
    %c2 = arith.constant 2 : index
    %c0_25 = arith.constant 0 : index
    %c0_26 = arith.constant 0 : index
    %50 = vector.load %arg4[%c2, %c0_25, %c0_26] : memref<4x16x8xf32, #tpu.memory_space<vmem>>, vector<1x16x8xf32>
    %51 = vector.shape_cast %50 : vector<1x16x8xf32> to vector<16x8xf32>
    %cst_27 = arith.constant dense<0.000000e+00> : vector<128x8xf32>
    %52 = tpu.matmul %49, %51, %cst_27 {dimension_numbers = #tpu.dot_dimension_numbers<[1], [0], [0], [1], [0, 0, 1, 1], [], []>} : vector<128x16xf32>, vector<16x8xf32>, vector<128x8xf32> -> vector<128x8xf32>
    %53 = arith.addf %52, %15 : vector<128x8xf32>
    %54 = vector.shape_cast %53 : vector<128x8xf32> to vector<8x16x8xf32>
    %c0_28 = arith.constant 0 : index
    %c0_29 = arith.constant 0 : index
    %c2_30 = arith.constant 2 : index
    %c0_31 = arith.constant 0 : index
    %c0_32 = arith.constant 0 : index
    %55 = vector.load %arg6[%c0_28, %c0_29, %c2_30, %c0_31, %c0_32] : memref<1x8x4x16x8xf32, #tpu.memory_space<vmem>>, vector<1x8x1x16x8xf32>
    %56 = vector.shape_cast %55 : vector<1x8x1x16x8xf32> to vector<8x16x8xf32>
    %57 = vector.shape_cast %54 : vector<8x16x8xf32> to vector<1x8x1x16x8xf32>
    tpu.vector_store %arg6[%c0_28, %c0_29, %c2_30, %c0_31, %c0_32], %57 {strides = array<i32>} : memref<1x8x4x16x8xf32, #tpu.memory_space<vmem>>, vector<1x8x1x16x8xf32>,
    %58 = vector.extract_strided_slice %9 {offsets = [1, 0, 0], sizes = [8, 16, 4], strides = [1, 1, 1]} : vector<10x16x4xf32> to vector<8x16x4xf32>
    %59 = vector.extract_strided_slice %12 {offsets = [1, 0, 0], sizes = [8, 16, 4], strides = [1, 1, 1]} : vector<10x16x4xf32> to vector<8x16x4xf32>
    %60 = vector.extract_strided_slice %9 {offsets = [2, 0, 0], sizes = [8, 16, 4], strides = [1, 1, 1]} : vector<10x16x4xf32> to vector<8x16x4xf32>
    %61 = vector.extract_strided_slice %12 {offsets = [2, 0, 0], sizes = [8, 16, 4], strides = [1, 1, 1]} : vector<10x16x4xf32> to vector<8x16x4xf32>
    %62 = tpu.concatenate %58, %59, %60, %61 in 2 : vector<8x16x4xf32>, vector<8x16x4xf32>, vector<8x16x4xf32>, vector<8x16x4xf32> -> vector<8x16x16xf32>
    %63 = vector.shape_cast %62 : vector<8x16x16xf32> to vector<128x16xf32>
    %c3 = arith.constant 3 : index
    %c0_33 = arith.constant 0 : index
    %c0_34 = arith.constant 0 : index
    %64 = vector.load %arg4[%c3, %c0_33, %c0_34] : memref<4x16x8xf32, #tpu.memory_space<vmem>>, vector<1x16x8xf32>
    %65 = vector.shape_cast %64 : vector<1x16x8xf32> to vector<16x8xf32>
    %cst_35 = arith.constant dense<0.000000e+00> : vector<128x8xf32>
    %66 = tpu.matmul %63, %65, %cst_35 {dimension_numbers = #tpu.dot_dimension_numbers<[1], [0], [0], [1], [0, 0, 1, 1], [], []>} : vector<128x16xf32>, vector<16x8xf32>, vector<128x8xf32> -> vector<128x8xf32>
    %67 = arith.addf %66, %15 : vector<128x8xf32>
    %68 = vector.shape_cast %67 : vector<128x8xf32> to vector<8x16x8xf32>
    %c0_36 = arith.constant 0 : index
    %c0_37 = arith.constant 0 : index
    %c3_38 = arith.constant 3 : index
    %c0_39 = arith.constant 0 : index
    %c0_40 = arith.constant 0 : index
    %69 = vector.load %arg6[%c0_36, %c0_37, %c3_38, %c0_39, %c0_40] : memref<1x8x4x16x8xf32, #tpu.memory_space<vmem>>, vector<1x8x1x16x8xf32>
    %70 = vector.shape_cast %69 : vector<1x8x1x16x8xf32> to vector<8x16x8xf32>
    %71 = vector.shape_cast %68 : vector<8x16x8xf32> to vector<1x8x1x16x8xf32>
    tpu.vector_store %arg6[%c0_36, %c0_37, %c3_38, %c0_39, %c0_40], %71 {strides = array<i32>} : memref<1x8x4x16x8xf32, #tpu.memory_space<vmem>>, vector<1x8x1x16x8xf32>,
    return
  }
  func.func @transform_0(%arg0: i32, %arg1: i32) -> (i32, i32, i32, i32) {
    %c0_i32 = arith.constant 0 : i32
    %c0_i32_0 = arith.constant 0 : i32
    %c0_i32_1 = arith.constant 0 : i32
    return %arg0, %arg1, %c0_i32, %c0_i32_0 : i32, i32, i32, i32
  }
  func.func @transform_1(%arg0: i32, %arg1: i32) -> (i32, i32, i32, i32) {
    %c2_i32 = arith.constant 2 : i32
    %0 = arith.muli %arg0, %c2_i32 : i32
    %1 = arith.addi %0, %arg1 : i32
    %c0_i32 = arith.constant 0 : i32
    %c0_i32_0 = arith.constant 0 : i32
    %c0_i32_1 = arith.constant 0 : i32
    %c0_i32_2 = arith.constant 0 : i32
    return %1, %c0_i32, %c0_i32_0, %c0_i32_1 : i32, i32, i32, i32
  }
  func.func @transform_2(%arg0: i32, %arg1: i32) -> (i32, i32, i32) {
    %c0_i32 = arith.constant 0 : i32
    %c0_i32_0 = arith.constant 0 : i32
    %c0_i32_1 = arith.constant 0 : i32
    %c0_i32_2 = arith.constant 0 : i32
    return %c0_i32, %c0_i32_0, %c0_i32_1 : i32, i32, i32
  }
  func.func @transform_3(%arg0: i32, %arg1: i32) -> (i32, i32) {
    %c0_i32 = arith.constant 0 : i32
    %c0_i32_0 = arith.constant 0 : i32
    %c0_i32_1 = arith.constant 0 : i32
    return %c0_i32, %c0_i32_0 : i32, i32
  }
  func.func @transform_4(%arg0: i32, %arg1: i32) -> (i32, i32, i32, i32, i32) {
    %c0_i32 = arith.constant 0 : i32
    %c0_i32_0 = arith.constant 0 : i32
    %c0_i32_1 = arith.constant 0 : i32
    %c0_i32_2 = arith.constant 0 : i32
    return %arg0, %arg1, %c0_i32, %c0_i32_0, %c0_i32_1 : i32, i32, i32, i32, i32
  }
}

</mosaic_0001>

<bundles_post_ra>
// kernel: tpu_custom_call.1
= control target key start
LH: loop header
LB: loop body
LE: loop exit
PB: predicated region body
PF: predicated region fallthrough
CT: control target
= control target key end

     0   :  { %s1587_s15 = smov 0   ;;  %s1589_s16 = smov 0   ;;  %s2338_s0 = inlined_call_operand.vmem [shape: f32[2,18,18,4], index: 0, kind: input, shape index: {}]   ;;  %s2339_s1 = inlined_call_operand.vmem [shape: f32[4,2,18,4], index: 1, kind: input, shape index: {}]   ;;  %s2340_s2 = inlined_call_operand.vmem [shape: f32[4,16,8], index: 2, kind: input, shape index: {}]   ;;  %s2341_s3 = inlined_call_operand.vmem [shape: f32[1,8], index: 3, kind: input, shape index: {}]   ;;  %s2342_s4 = inlined_call_operand.vmem [shape: f32[2,16,4,16,8], index: 4, kind: output, shape index: {}]  }
   0x1   :  { %s1591_s17 = smov 0   ;;  %s1593_s18 = smov 0  }
   0x2   :  { %s1595_s19 = smov 0  }
   0x3 LB: > { %s23_s20 = sadd.s32 1, %s1549_s17  ;;  %s26_s21 = sadd.s32 1, %s1553_s18  ;;  %s1557_s19 = sphi %s1595_s19, %s14_s19   ;;  %s1553_s18 = sphi %s1593_s18, %s2346_s18   ;;  %s1549_s17 = sphi %s1591_s17, %s2345_s17   ;;  %s1545_s16 = sphi %s1589_s16, %s2344_s16   ;;  %s1541_s15 = sphi %s1587_s15, %s2343_s15  }
   0x4   : > { %p24_p0 = scmp.ge.s32.totalorder %s23_s20, 2  ;;  %p1343_p1 = scmp.ge.s32.totalorder %s1557_s19, 1 }
   0x5   : > { %p212_p2 = scmp.lt.s32.totalorder %s1557_s19, 5 }
   0x6   : > { %s2348_s20 = smov (%p24_p0, %s23_s20), 0  ;;  %s2350_s21 = smov (!%p24_p0, %s26_s21), %s1553_s18 }
   0x7   : > { %p213_p3 = pnand %p1343_p1, %p212_p2  ;;  %p28_p4 = scmp.ge.s32.totalorder %s2350_s21, 2 }
   0x8   : > { %s1344_s22 = sshll.u32 (!%p213_p3), %s1541_s15, 3  ;;  %p266_p5 = scmp.lt.s32.totalorder (!%p213_p3), %s1545_s16, 1 }
   0x9   : > { %s2352_s21 = smov (%p28_p4, %s2350_s21), 0  ;;  %216 = sbr.rel (%p213_p3) target bundleno = 490 (0x1ea), region = 36 }
   0xa   : > { %p268_p6 = scmp.lt.s32.totalorder (!%p213_p3), %s1344_s22, 17  ;;  %p293_p7 = scmp.lt.s32.totalorder (!%p213_p3), %s1344_s22, 15 }
   0xb   : > { %s1559_s9 = smov (!%p213_p3), 8   ;;  %s1560_s10 = smov (!%p213_p3), 4  }
   0xc   : > { %s1561_s11 = smov (!%p213_p3), 12   ;;  %s1346_s14 = sshll.u32 (!%p213_p3), %s1545_s16, 1 }
   0xe   : > { %s267_s23 = scalar_select %p266_p5, %s1545_s16, 1  ;;  %vm359_vm0 = vcmask 1046528   ;;  %v1403_v40 = vld [vmem:[%s2340_s2 + $0x28] sm:$0xff]  ;;  %v1402_v41 = vld [vmem:[%s2340_s2 + $0x20] sm:$0xff]  ;;  %v1437_v45 = vld [vmem:[%s2340_s2 + $0x38] sm:$0xff]  ;;  %vm552_vm1 = vcmask 31744  }
   0xf   : > { %s269_s24 = scalar_select %p268_p6, %s1344_s22, 17  ;;  %1051 = vmatpush.msra.mxu2 %v1403_v40  ;;  %1158 = vmatpush.msra.mxu3 %v1437_v45  ;;  %v1436_v48 = vld [vmem:[%s2340_s2 + $0x30] sm:$0xff]  ;;  %v604_v53 = vld [vmem:[%s2340_s2 + $0x8] sm:$0xff]  ;;  %v603_v54 = vld [vmem:[%s2340_s2] sm:$0xff]  ;;  %vm569_vm2 = vcmask 64512   ;;  %vm586_vm3 = vcmask 97280  }
  0x10   : > { %s1473_s25 = smul.u32 54, %s267_s23  ;;  %s1350_s27 = sshll.u32 %s267_s23, 7  ;;  %668 = vmatpush.msra.mxu0 %v604_v53  ;;  %v1369_v57 = vld [vmem:[%s2340_s2 + $0x18] sm:$0xff]  ;;  %v1368_v58 = vld [vmem:[%s2340_s2 + $0x10] sm:$0xff]  ;;  %vm605_vm4 = vcmask 130048  }
  0x11   : > { %s1472_s26 = smul.u32 3, %s269_s24  ;;  %s2354_s22 = smov (!%p293_p7, %s1344_s22), 15  ;;  %1052 = vmatpush.msra.mxu2 %v1402_v41  ;;  %1159 = vmatpush.msra.mxu3 %v1436_v48 }
  0x12   : > { %s1349_s30 = sshll.u32 %s2354_s22, 3  ;;  %669 = vmatpush.msra.mxu0 %v603_v54  ;;  %928 = vmatpush.msra.mxu1 %v1369_v57  ;;  %s282_s22 = sadd.s32 %s1541_s15, %s1346_s14 }
  0x13   : > { %s272_s28 = sadd.s32 %s1473_s25, %s1472_s26  ;;  %s1629_s8 = sadd.s32 %s1350_s27, %s1349_s30 }
  0x14   : > { %s1345_s29 = sshll.u32 %s272_s28, 3  ;;  %929 = vmatpush.msra.mxu1 %v1368_v58  ;;  %p283_p8 = scmp.lt.s32.totalorder %s282_s22, 3 }
  0x15   : > { %s1627_s7 = scalar_lea.vmem %s2338_s0, %s1345_s29 }
  0x16   : > { %v1632_v0 = vld [vmem:[%s1627_s7 + $0x30] sm:$0xff]  ;;  %v1635_v1 = vld [vmem:[%s1627_s7 + $0x18] sm:$0xff]  ;;  %v1638_v2 = vld [vmem:[%s1627_s7 + $0x20] sm:$0xff]  ;;  %s2356_s22 = smov (!%p283_p8, %s282_s22), 3 }
  0x17   : > { %454 = vrot.lane.b32.xlu1 %v1632_v0, %s1559_s9  ;;  %v370_v3 = vrot.slane %v1632_v0, 1  ;;  %v365_v4 = vrot.slane %v1635_v1, 1  ;;  %v366_v5 = vrot.slane %v1638_v2, 1  ;;  %v1646_v6 = vld [vmem:[%s1627_s7 + $0x38] sm:$0xff]  ;;  %v1650_v8 = vld [vmem:[%s1627_s7 + $0x28] sm:$0x3] }
  0x18   : > { %v371_v7 = vrot.slane %v1646_v6, 1  ;;  %v1654_v10 = vld [vmem:[%s1627_s7 + $0x40] sm:$0x3]  ;;  %v368_v12 = vrot.slane %v1650_v8, 1  ;;  %v1662_v14 = vld [vmem:[%s1627_s7 + $0x8] sm:$0xff]  ;;  %v1701_v25 = vld [vmem:[%s1627_s7 + $0x50] sm:$0xff] }
  0x19   : > { %v367_v9 = vsel %vm359_vm0, %v365_v4, %v366_v5  ;;  %v373_v13 = vrot.slane %v1654_v10, 1  ;;  %v1665_v15 = vld [vmem:[%s1627_s7 + $0x10] sm:$0x3]  ;;  %v361_v17 = vrot.slane %v1662_v14, 1  ;;  %v1673_v19 = vld [vmem:[%s1627_s7] sm:$0xff]  ;;  %v1698_v24 = vld [vmem:[%s1627_s7 + $0x48] sm:$0xff] }
  0x1a   : > { %404 = vrot.lane.b32.xlu0 %v367_v9, %s1560_s10  ;;  %v372_v11 = vsel %vm359_vm0, %v370_v3, %v371_v7  ;;  %v369_v16 = vsel %vm359_vm0, %v366_v5, %v368_v12  ;;  %v363_v18 = vrot.slane %v1665_v15, 1  ;;  %v360_v21 = vrot.slane %v1673_v19, 1  ;;  %v1711_v29 = vld [vmem:[%s1627_s7 + $0x58] sm:$0x3]  ;;  %v1724_v32 = vld [vmem:[%s1627_s7 + $0x60] sm:$0xff]  ;;  %v1727_v33 = vld [vmem:[%s1627_s7 + $0x68] sm:$0xff] }
  0x1b   : > { %508 = vrot.lane.b32.xlu2 %v372_v11, %s1561_s11  ;;  %v374_v20 = vsel %vm359_vm0, %v371_v7, %v373_v13  ;;  %v375_v26 = vrot.slane %v1698_v24, 1  ;;  %v376_v27 = vrot.slane %v1701_v25, 1  ;;  %v378_v30 = vrot.slane %v1711_v29, 1  ;;  %v1737_v37 = vld [vmem:[%s1627_s7 + $0x70] sm:$0x3]  ;;  %v1756_v42 = vld [vmem:[%s1627_s7 + $0x78] sm:$0xff] }
  0x1c   : > { %v364_v22 = vsel %vm359_vm0, %v361_v17, %v363_v18  ;;  %v362_v23 = vsel %vm359_vm0, %v360_v21, %v361_v17  ;;  %v380_v34 = vrot.slane %v1724_v32, 1  ;;  %v381_v35 = vrot.slane %v1727_v33, 1  ;;  %v1759_v43 = vld [vmem:[%s1627_s7 + $0x80] sm:$0xff]  ;;  %v1775_v50 = vld [vmem:[%s1627_s7 + $0x88] sm:$0x3]  ;;  %v1802_v62 = vld [vmem:[%s1627_s7 + $0x90] sm:$0xff] }
  0x1d   : > { %v377_v28 = vsel %vm359_vm0, %v375_v26, %v376_v27  ;;  %v379_v31 = vsel %vm359_vm0, %v376_v27, %v378_v30  ;;  %v383_v38 = vrot.slane %v1737_v37, 1  ;;  %v385_v46 = vrot.slane %v1756_v42, 1  ;;  %v1805_v63 = vld [vmem:[%s1627_s7 + $0x98] sm:$0xff]  ;;  %v1863_v40 = vld [vmem:[%s1627_s7 + $0xa8] sm:$0xff]  ;;  %v1866_v41 = vld [vmem:[%s1627_s7 + $0xb0] sm:$0xff]  ;;  %s1474_s15 = smul.u32 48, %s2356_s22 }
  0x1e   : > { %v382_v36 = vsel %vm359_vm0, %v380_v34, %v381_v35  ;;  %v386_v47 = vrot.slane %v1759_v43, 1  ;;  %v388_v52 = vrot.slane %v1775_v50, 1  ;;  %v390_v7 = vrot.slane %v1802_v62, 1  ;;  %v1885_v57 = vld [vmem:[%s1627_s7 + $0xb8] sm:$0x3] }
  0x1f   : > { %456 = vrot.lane.b32.xlu1 %v1646_v6, %s1559_s9  ;;  %v384_v39 = vsel %vm359_vm0, %v381_v35, %v383_v38  ;;  %v395_v48 = vrot.slane %v1863_v40, 1  ;;  %s1912_s23 = scalar_lea.vmem %s2339_s1, %s1474_s15 }
  0x20   : > { %v387_v49 = vsel %vm359_vm0, %v385_v46, %v386_v47  ;;  %v389_v55 = vsel %vm359_vm0, %v386_v47, %v388_v52 }
  0x22   : > { %406 = vrot.lane.b32.xlu0 %v369_v16, %s1560_s10 }
  0x23   : > { %510 = vrot.lane.b32.xlu2 %v374_v20, %s1561_s11 }
  0x27   : > { %402 = vrot.lane.b32.xlu1 %v364_v22, %s1560_s10 }
  0x2a   : > { %400 = vrot.lane.b32.xlu0 %v362_v23, %s1560_s10 }
  0x2b   : > { %450 = vrot.lane.b32.xlu2 %v1635_v1, %s1559_s9 }
  0x2f   : > { %504 = vrot.lane.b32.xlu1 %v367_v9, %s1561_s11 }
  0x32   : > { %452 = vrot.lane.b32.xlu0 %v1638_v2, %s1559_s9 }
  0x33   : > { %506 = vrot.lane.b32.xlu2 %v369_v16, %s1561_s11  ;;  %v1823_v16 = vld [vmem:[%s1627_s7 + $0xa0] sm:$0x3] }
  0x37   : > { %761 = vrot.lane.b32.xlu1 %v1654_v10, %s1559_s9 }
  0x3a   : > { %737 = vrot.lane.b32.xlu0 %v368_v12, %s1560_s10 }
  0x3b   : > { %785 = vrot.lane.b32.xlu2 %v373_v13, %s1561_s11 }
  0x3f   : > { %759 = vrot.lane.b32.xlu1 %v1650_v8, %s1559_s9 }
  0x42   : > { %735 = vrot.lane.b32.xlu0 %v363_v18, %s1560_s10 }
  0x43   : > { %408 = vrot.lane.b32.xlu2 %v372_v11, %s1560_s10 }
  0x47   : > { %783 = vrot.lane.b32.xlu1 %v368_v12, %s1561_s11 }
  0x4a   : > { %410 = vrot.lane.b32.xlu0 %v374_v20, %s1560_s10  ;;  %v1827_v20 = vrot.slane %v1823_v16, 1 }
  0x4b   : > { %458 = vrot.lane.b32.xlu2 %v1698_v24, %s1559_s9 }
  0x4f   : > { %512 = vrot.lane.b32.xlu1 %v377_v28, %s1561_s11 }
  0x52   : > { %460 = vrot.lane.b32.xlu0 %v1701_v25, %s1559_s9 }
  0x53   : > { %514 = vrot.lane.b32.xlu2 %v379_v31, %s1561_s11 }
  0x57   : > { %763 = vrot.lane.b32.xlu1 %v1711_v29, %s1559_s9 }
  0x5a   : > { %739 = vrot.lane.b32.xlu0 %v373_v13, %s1560_s10 }
  0x5b   : > { %787 = vrot.lane.b32.xlu2 %v378_v30, %s1561_s11 }
  0x5f   : > { %414 = vrot.lane.b32.xlu1 %v379_v31, %s1560_s10 }
  0x62   : > { %412 = vrot.lane.b32.xlu0 %v377_v28, %s1560_s10 }
  0x63   : > { %462 = vrot.lane.b32.xlu2 %v1724_v32, %s1559_s9 }
  0x67   : > { %516 = vrot.lane.b32.xlu1 %v382_v36, %s1561_s11 }
  0x6a   : > { %464 = vrot.lane.b32.xlu0 %v1727_v33, %s1559_s9 }
  0x6b   : > { %518 = vrot.lane.b32.xlu2 %v384_v39, %s1561_s11 }
  0x6f   : > { %765 = vrot.lane.b32.xlu1 %v1737_v37, %s1559_s9 }
  0x72   : > { %741 = vrot.lane.b32.xlu0 %v378_v30, %s1560_s10 }
  0x73   : > { %789 = vrot.lane.b32.xlu2 %v383_v38, %s1561_s11 }
  0x75   : > { %v509_v44 = vpop.permute.xlu2 %508 }
  0x77   : > { %418 = vrot.lane.b32.xlu1 %v384_v39, %s1560_s10 }
  0x7a   : > { %416 = vrot.lane.b32.xlu0 %v382_v36, %s1560_s10 }
  0x7b   : > { %466 = vrot.lane.b32.xlu2 %v1756_v42, %s1559_s9 }
  0x7d   : > { %v511_v51 = vpop.permute.xlu2 %510 }
  0x7f   : > { %520 = vrot.lane.b32.xlu1 %v387_v49, %s1561_s11 }
  0x82   : > { %468 = vrot.lane.b32.xlu0 %v1759_v43, %s1559_s9 }
  0x83   : > { %522 = vrot.lane.b32.xlu2 %v389_v55, %s1561_s11 }
  0x85   : > { %v451_v56 = vpop.permute.xlu2 %450 }
  0x87   : > { %767 = vrot.lane.b32.xlu1 %v1775_v50, %s1559_s9 }
  0x89   : > { %v455_v59 = vpop.permute.xlu1 %454 }
  0x8a   : > { %743 = vrot.lane.b32.xlu0 %v383_v38, %s1560_s10 }
  0x8b   : > { %791 = vrot.lane.b32.xlu2 %v388_v52, %s1561_s11 }
  0x8c   : > { %v405_v60 = vpop.permute.xlu0 %404 }
  0x8d   : > { %v555_v61 = vsel %vm552_vm1, %v1635_v1, %v405_v60  ;;  %v507_v3 = vpop.permute.xlu2 %506  ;;  %v391_v1 = vrot.slane %v1805_v63, 1 }
  0x8e   : > { %v572_v4 = vsel %vm569_vm2, %v555_v61, %v455_v59  ;;  %v1890_v59 = vrot.slane %v1885_v57, 1 }
  0x8f   : > { %422 = vrot.lane.b32.xlu1 %v389_v55, %s1560_s10  ;;  %v1810_v5 = vsel %vm586_vm3, %v572_v4, %v509_v44  ;;  %v392_v12 = vsel %vm359_vm0, %v390_v7, %v391_v1  ;;  %v394_v27 = vsel %vm359_vm0, %v391_v1, %v1827_v20 }
  0x90   : > { %1404 = vmatmul.msk.f32.vlgmr.msra.gmra.mxu2 %vm605_vm4, %v1810_v5  ;;  %v844_v22 = vrot.slane %v1810_v5, 1 }
  0x91   : > { %v457_v9 = vpop.permute.xlu1 %456 }
  0x92   : > { %420 = vrot.lane.b32.xlu0 %v387_v49, %s1560_s10 }
  0x93   : > { %470 = vrot.lane.b32.xlu2 %v1802_v62, %s1559_s9 }
  0x94   : > { %v407_v11 = vpop.permute.xlu0 %406 }
  0x95   : > { %v556_v13 = vsel %vm552_vm1, %v1638_v2, %v407_v11  ;;  %v786_v17 = vpop.permute.xlu2 %785 }
  0x96   : > { %v573_v18 = vsel %vm569_vm2, %v556_v13, %v457_v9 }
  0x97   : > { %524 = vrot.lane.b32.xlu1 %v392_v12, %s1561_s11  ;;  %v1831_v21 = vsel %vm586_vm3, %v573_v18, %v511_v51  ;;  %v1923_v18 = vld [vmem:[%s1912_s23 + $0x8] sm:$0xff] }
  0x98   : > { %v845_v23 = vrot.slane %v1831_v21, 1  ;;  %1405 = vmatmul.msk.f32.gmra.mxu2 %vm605_vm4, %v1831_v21 }
  0x99   : > { %v403_v2 = vpop.permute.xlu1 %402 }
  0x9a   : > { %472 = vrot.lane.b32.xlu0 %v1805_v63, %s1559_s9  ;;  %v1840_v26 = vsel %vm359_vm0, %v844_v22, %v845_v23  ;;  %v554_v38 = vsel %vm552_vm1, %v1662_v14, %v403_v2  ;;  %v396_v14 = vrot.slane %v1866_v41, 1 }
  0x9b   : > { %1438 = vmatmul.msk.f32.vlgmr.msra.gmra.mxu3 %vm605_vm4, %v1840_v26  ;;  %526 = vrot.lane.b32.xlu2 %v394_v27, %s1561_s11 }
  0x9c   : > { %v401_v28 = vpop.permute.xlu0 %400  ;;  %v397_v53 = vsel %vm359_vm0, %v395_v48, %v396_v14 }
  0x9d   : > { %v1847_v30 = vpop.permute.xlu2 %408  ;;  %v553_v31 = vsel %vm552_vm1, %v1673_v19, %v401_v28 }
  0x9e   : > { %v570_v35 = vsel %vm569_vm2, %v553_v31, %v451_v56  ;;  %v557_v22 = vsel %vm552_vm1, %v1632_v0, %v1847_v30 }
  0x9f   : > { %769 = vrot.lane.b32.xlu1 %v1823_v16, %s1559_s9 }
  0xa1   : > { %v505_v34 = vpop.permute.xlu1 %504 }
  0xa2   : > { %745 = vrot.lane.b32.xlu0 %v388_v52, %s1560_s10  ;;  %v587_v36 = vsel %vm586_vm3, %v570_v35, %v505_v34 }
  0xa3   : > { %1352 = vmatmul.msk.f32.vlgmr.msra.gmra.mxu0 %vm605_vm4, %v587_v36  ;;  %793 = vrot.lane.b32.xlu2 %v1827_v20, %s1561_s11  ;;  %v839_v46 = vrot.slane %v587_v36, 1 }
  0xa4   : > { %v453_v19 = vpop.permute.xlu0 %452 }
  0xa5   : > { %v571_v39 = vsel %vm569_vm2, %v554_v38, %v453_v19  ;;  %v459_v44 = vpop.permute.xlu2 %458  ;;  %v1947_v38 = vld [vmem:[%s1912_s23 + $0x10] sm:$0x3] }
  0xa6   : > { %v588_v45 = vsel %vm586_vm3, %v571_v39, %v507_v3  ;;  %v399_v3 = vsel %vm359_vm0, %v396_v14, %v1890_v59  ;;  %v574_v2 = vsel %vm569_vm2, %v557_v22, %v459_v44 }
  0xa7   : > { %v840_v47 = vrot.slane %v588_v45, 1  ;;  %426 = vrot.lane.b32.xlu1 %v394_v27, %s1560_s10 }
  0xa9   : > { %v762_v49 = vpop.permute.xlu1 %761  ;;  %v841_v51 = vsel %vm359_vm0, %v839_v46, %v840_v47 }
  0xaa   : > { %424 = vrot.lane.b32.xlu0 %v392_v12, %s1560_s10  ;;  %1370 = vmatmul.msk.f32.vlgmr.msra.gmra.mxu1 %vm605_vm4, %v841_v51 }
  0xab   : > { %1353 = vmatmul.msk.f32.gmra.mxu0 %vm605_vm4, %v588_v45  ;;  %474 = vrot.lane.b32.xlu2 %v1863_v40, %s1559_s9 }
  0xac   : > { %v738_v52 = vpop.permute.xlu0 %737 }
  0xad   : > { %v808_v54 = vsel %vm552_vm1, %v1650_v8, %v738_v52  ;;  %v515_v55 = vpop.permute.xlu2 %514 }
  0xae   : > { %v816_v56 = vsel %vm569_vm2, %v808_v54, %v762_v49  ;;  %v328_v54 = vld [vmem:[%s1912_s23 + $0x18] sm:$0xff] }
  0xaf   : > { %v824_v58 = vsel %vm586_vm3, %v816_v56, %v786_v17  ;;  %528 = vrot.lane.b32.xlu1 %v397_v53, %s1561_s11  ;;  %v1920_v17 = vld [vmem:[%s1912_s23] sm:$0xff] }
  0xb0   : > { %v847_v60 = vrot.slane %v824_v58, 1 }
  0xb1   : > { %v760_v61 = vpop.permute.xlu1 %759 }
  0xb2   : > { %476 = vrot.lane.b32.xlu0 %v1866_v41, %s1559_s9  ;;  %v848_v8 = vsel %vm359_vm0, %v845_v23, %v847_v60  ;;  %v500_v23 = vrot.slane %v1923_v18, 1 }
  0xb3   : > { %1354 = vmatmul.msk.f32.gmra.mxu0 %vm605_vm4, %v1810_v5  ;;  %1439 = vmatmul.msk.f32.gmra.mxu3 %vm605_vm4, %v848_v8 }
  0xb4   : > { %v736_v4 = vpop.permute.xlu0 %735  ;;  %530 = vrot.lane.b32.xlu2 %v399_v3, %s1561_s11 }
  0xb5   : > { %v788_v7 = vpop.permute.xlu2 %787  ;;  %v807_v1 = vsel %vm552_vm1, %v1665_v15, %v736_v4 }
  0xb6   : > { %v815_v11 = vsel %vm569_vm2, %v807_v1, %v760_v61  ;;  %v330_v1 = vld [vmem:[%s1912_s23 + $0x28] sm:$0x3] }
  0xb7   : > { %771 = vrot.lane.b32.xlu1 %v1885_v57, %s1559_s9 }
  0xb9   : > { %v784_v9 = vpop.permute.xlu1 %783 }
  0xba   : > { %v823_v5 = vsel %vm586_vm3, %v815_v11, %v784_v9  ;;  %747 = vrot.lane.b32.xlu0 %v1827_v20, %s1560_s10  ;;  %v1014_v11 = vrot.slane %v330_v1, 1 }
  0xbb   : > { %v842_v15 = vrot.slane %v823_v5, 1  ;;  %1355 = vmatmul.msk.f32.gmra.mxu0 %vm605_vm4, %v1831_v21  ;;  %v499_v21 = vrot.slane %v1920_v17, 1 }
  0xbc   : > { %v411_v12 = vpop.permute.xlu0 %410  ;;  %795 = vrot.lane.b32.xlu2 %v1890_v59, %s1561_s11 }
  0xbd   : > { %v843_v13 = vsel %vm359_vm0, %v840_v47, %v842_v15  ;;  %v463_v20 = vpop.permute.xlu2 %462  ;;  %v558_v0 = vsel %vm552_vm1, %v1646_v6, %v411_v12  ;;  %v501_v31 = vsel %vm359_vm0, %v499_v21, %v500_v23  ;;  %v1951_v6 = vrot.slane %v1947_v38, 1 }
  0xbe   : > { %1371 = vmatmul.msk.f32.gmra.mxu1 %vm605_vm4, %v843_v13 }
  0xbf   : > { %430 = vrot.lane.b32.xlu1 %v399_v3, %s1560_s10 }
  0xc1   : > { %v513_v27 = vpop.permute.xlu1 %512 }
  0xc2   : > { %428 = vrot.lane.b32.xlu0 %v397_v53, %s1560_s10  ;;  %v591_v28 = vsel %vm586_vm3, %v574_v2, %v513_v27 }
  0xc3   : > { %1356 = vmatmul.msk.f32.gmra.mxu0 %vm605_vm4, %v591_v28  ;;  %1406 = vmatmul.msk.f32.gmra.mxu2 %vm605_vm4, %v591_v28  ;;  %v849_v19 = vrot.slane %v591_v28, 1 }
  0xc4   : > { %v461_v30 = vpop.permute.xlu0 %460  ;;  %478 = vrot.lane.b32.xlu2 %v1920_v17, %s1559_s9 }
  0xc5   : > { %v575_v34 = vsel %vm569_vm2, %v558_v0, %v461_v30  ;;  %v519_v35 = vpop.permute.xlu2 %518 }
  0xc6   : > { %v592_v36 = vsel %vm586_vm3, %v575_v34, %v515_v55  ;;  %1372 = vmatmul.msk.f32.gmra.mxu1 %vm605_vm4, %v1840_v26  ;;  %v503_v26 = vsel %vm359_vm0, %v500_v23, %v1951_v6  ;;  %v329_v55 = vld [vmem:[%s1912_s23 + $0x20] sm:$0xff] }
  0xc7   : > { %v850_v39 = vrot.slane %v592_v36, 1  ;;  %532 = vrot.lane.b32.xlu1 %v501_v31, %s1561_s11  ;;  %v1012_v60 = vrot.slane %v329_v55, 1 }
  0xc9   : > { %v764_v44 = vpop.permute.xlu1 %763  ;;  %v851_v45 = vsel %vm359_vm0, %v849_v19, %v850_v39  ;;  %v1015_v22 = vsel %vm359_vm0, %v1012_v60, %v1014_v11 }
  0xca   : > { %480 = vrot.lane.b32.xlu0 %v1923_v18, %s1559_s9  ;;  %1440 = vmatmul.msk.f32.gmra.mxu3 %vm605_vm4, %v851_v45 }
  0xcb   : > { %1357 = vmatmul.msk.f32.gmra.mxu0 %vm605_vm4, %v592_v36  ;;  %1407 = vmatmul.msk.f32.gmra.mxu2 %vm605_vm4, %v592_v36 }
  0xcc   : > { %v740_v46 = vpop.permute.xlu0 %739  ;;  %534 = vrot.lane.b32.xlu2 %v503_v26, %s1561_s11 }
  0xcd   : > { %v809_v47 = vsel %vm552_vm1, %v1654_v10, %v740_v46  ;;  %v790_v48 = vpop.permute.xlu2 %789 }
  0xce   : > { %v817_v14 = vsel %vm569_vm2, %v809_v47, %v764_v44  ;;  %1373 = vmatmul.msk.f32.gmra.mxu1 %vm605_vm4, %v848_v8 }
  0xcf   : > { %v825_v49 = vsel %vm586_vm3, %v817_v14, %v788_v7  ;;  %773 = vrot.lane.b32.xlu1 %v1947_v38, %s1559_s9 }
  0xd0   : > { %v852_v51 = vrot.slane %v825_v49, 1 }
  0xd1   : > { %v415_v52 = vpop.permute.xlu1 %414 }
  0xd2   : > { %749 = vrot.lane.b32.xlu0 %v1890_v59, %s1560_s10  ;;  %v853_v53 = vsel %vm359_vm0, %v850_v39, %v852_v51  ;;  %v1011_v59 = vrot.slane %v328_v54, 1 }
  0xd3   : > { %1441 = vmatmul.msk.f32.gmra.mxu3 %vm605_vm4, %v853_v53 }
  0xd4   : > { %v413_v10 = vpop.permute.xlu0 %412  ;;  %797 = vrot.lane.b32.xlu2 %v1951_v6, %s1561_s11  ;;  %v1013_v7 = vsel %vm359_vm0, %v1011_v59, %v1012_v60 }
  0xd5   : > { %v467_v56 = vpop.permute.xlu2 %466  ;;  %v559_v58 = vsel %vm552_vm1, %v1698_v24, %v413_v10  ;;  %v560_v24 = vsel %vm552_vm1, %v1701_v25, %v415_v52 }
  0xd6   : > { %1374 = vmatmul.msk.f32.gmra.mxu1 %vm605_vm4, %v851_v45  ;;  %v576_v61 = vsel %vm569_vm2, %v559_v58, %v463_v20 }
  0xd7   : > { %998 = vrot.lane.b32.xlu1 %v503_v26, %s1560_s10 }
  0xd9   : > { %v517_v8 = vpop.permute.xlu1 %516 }
  0xda   : > { %996 = vrot.lane.b32.xlu0 %v501_v31, %s1560_s10  ;;  %v593_v3 = vsel %vm586_vm3, %v576_v61, %v517_v8 }
  0xdb   : > { %1358 = vmatmul.msk.f32.gmra.mxu0 %vm605_vm4, %v593_v3  ;;  %1408 = vmatmul.msk.f32.gmra.mxu2 %vm605_vm4, %v593_v3  ;;  %v854_v12 = vrot.slane %v593_v3, 1 }
  0xdc   : > { %v465_v4 = vpop.permute.xlu0 %464  ;;  %1004 = vrot.lane.b32.xlu2 %v328_v54, %s1559_s9 }
  0xdd   : > { %v577_v9 = vsel %vm569_vm2, %v560_v24, %v465_v4  ;;  %v523_v5 = vpop.permute.xlu2 %522 }
  0xde   : > { %v594_v15 = vsel %vm586_vm3, %v577_v9, %v519_v35  ;;  %1375 = vmatmul.msk.f32.gmra.mxu1 %vm605_vm4, %v853_v53 }
  0xdf   : > { %v855_v13 = vrot.slane %v594_v15, 1  ;;  %1016 = vrot.lane.b32.xlu1 %v1013_v7, %s1561_s11 }
  0xe1   : > { %v766_v20 = vpop.permute.xlu1 %765  ;;  %v856_v25 = vsel %vm359_vm0, %v854_v12, %v855_v13 }
  0xe2   : > { %1006 = vrot.lane.b32.xlu0 %v329_v55, %s1559_s9  ;;  %1442 = vmatmul.msk.f32.gmra.mxu3 %vm605_vm4, %v856_v25 }
  0xe3   : > { %1359 = vmatmul.msk.f32.gmra.mxu0 %vm605_vm4, %v594_v15  ;;  %1409 = vmatmul.msk.f32.gmra.mxu2 %vm605_vm4, %v594_v15 }
  0xe4   : > { %v742_v21 = vpop.permute.xlu0 %741  ;;  %1018 = vrot.lane.b32.xlu2 %v1015_v22, %s1561_s11 }
  0xe5   : > { %v810_v23 = vsel %vm552_vm1, %v1711_v29, %v742_v21  ;;  %v792_v2 = vpop.permute.xlu2 %791 }
  0xe6   : > { %v818_v27 = vsel %vm569_vm2, %v810_v23, %v766_v20  ;;  %1376 = vmatmul.msk.f32.gmra.mxu1 %vm605_vm4, %v856_v25 }
  0xe7   : > { %v826_v28 = vsel %vm586_vm3, %v818_v27, %v790_v48  ;;  %1122 = vrot.lane.b32.xlu1 %v330_v1, %s1559_s9  ;;  %s1351_s9 = sshll.u32 %s1629_s8, 3  ;;  %v2050_v1 = vld [vmem:[%s2341_s3] ss:$0 sm:$0xff] }
  0xe8   : > { %v857_v0 = vrot.slane %v826_v28, 1  ;;  %s2058_s26 = scalar_lea.vmem %s2342_s4, %s1351_s9 }
  0xe9   : > { %v419_v30 = vpop.permute.xlu1 %418 }
  0xea   : > { %1119 = vrot.lane.b32.xlu0 %v1951_v6, %s1560_s10  ;;  %v858_v31 = vsel %vm359_vm0, %v855_v13, %v857_v0  ;;  %v562_v6 = vsel %vm552_vm1, %v1727_v33, %v419_v30 }
  0xeb   : > { %1443 = vmatmul.msk.f32.gmra.mxu3 %vm605_vm4, %v858_v31 }
  0xec   : > { %v417_v34 = vpop.permute.xlu0 %416  ;;  %1125 = vrot.lane.b32.xlu2 %v1014_v11, %s1561_s11 }
  0xed   : > { %v561_v29 = vsel %vm552_vm1, %v1724_v32, %v417_v34  ;;  %v471_v35 = vpop.permute.xlu2 %470 }
  0xee   : > { %1377 = vmatmul.msk.f32.gmra.mxu1 %vm605_vm4, %v858_v31  ;;  %v578_v36 = vsel %vm569_vm2, %v561_v29, %v467_v56 }
  0xf1   : > { %v521_v19 = vpop.permute.xlu1 %520 }
  0xf2   : > { %v595_v39 = vsel %vm586_vm3, %v578_v36, %v521_v19 }
  0xf3   : > { %1360 = vmatmul.msk.f32.gmra.mxu0 %vm605_vm4, %v595_v39  ;;  %1410 = vmatmul.msk.f32.gmra.mxu2 %vm605_vm4, %v595_v39  ;;  %v859_v26 = vrot.slane %v595_v39, 1 }
  0xf4   : > { %v469_v44 = vpop.permute.xlu0 %468 }
  0xf5   : > { %v579_v45 = vsel %vm569_vm2, %v562_v6, %v469_v44  ;;  %v527_v47 = vpop.permute.xlu2 %526 }
  0xf6   : > { %v596_v32 = vsel %vm586_vm3, %v579_v45, %v523_v5 }
  0xf7   : > { %v860_v46 = vrot.slane %v596_v32, 1 }
  0xf9   : > { %v768_v48 = vpop.permute.xlu1 %767  ;;  %v861_v14 = vsel %vm359_vm0, %v859_v26, %v860_v46 }
  0xfa   : > { %1378 = vmatmul.msk.f32.gmra.mxu1 %vm605_vm4, %v861_v14  ;;  %1444 = vmatmul.msk.f32.gmra.mxu3 %vm605_vm4, %v861_v14 }
  0xfb   : > { %1361 = vmatmul.msk.f32.gmra.mxu0 %vm605_vm4, %v596_v32  ;;  %1411 = vmatmul.msk.f32.gmra.mxu2 %vm605_vm4, %v596_v32 }
  0xfc   : > { %v744_v33 = vpop.permute.xlu0 %743 }
  0xfd   : > { %v811_v49 = vsel %vm552_vm1, %v1737_v37, %v744_v33  ;;  %v794_v55 = vpop.permute.xlu2 %793 }
  0xfe   : > { %v819_v51 = vsel %vm569_vm2, %v811_v49, %v768_v48 }
  0xff   : > { %v827_v52 = vsel %vm586_vm3, %v819_v51, %v792_v2 }
 0x100   : > { %v862_v53 = vrot.slane %v827_v52, 1 }
 0x101   : > { %v423_v10 = vpop.permute.xlu1 %422 }
 0x102   : > { %v863_v54 = vsel %vm359_vm0, %v860_v46, %v862_v53  ;;  %v564_v61 = vsel %vm552_vm1, %v1759_v43, %v423_v10 }
 0x103   : > { %1379 = vmatmul.msk.f32.gmra.mxu1 %vm605_vm4, %v863_v54  ;;  %1445 = vmatmul.msk.f32.gmra.mxu3 %vm605_vm4, %v863_v54 }
 0x104   : > { %v421_v56 = vpop.permute.xlu0 %420 }
 0x105   : > { %v563_v58 = vsel %vm552_vm1, %v1756_v42, %v421_v56  ;;  %v475_v3 = vpop.permute.xlu2 %474 }
 0x106   : > { %v580_v37 = vsel %vm569_vm2, %v563_v58, %v471_v35 }
 0x109   : > { %v525_v59 = vpop.permute.xlu1 %524 }
 0x10a   : > { %v597_v60 = vsel %vm586_vm3, %v580_v37, %v525_v59 }
 0x10b   : > { %1362 = vmatmul.msk.f32.gmra.mxu0 %vm605_vm4, %v597_v60  ;;  %1412 = vmatmul.msk.f32.gmra.mxu2 %vm605_vm4, %v597_v60  ;;  %v864_v7 = vrot.slane %v597_v60, 1 }
 0x10c   : > { %v473_v8 = vpop.permute.xlu0 %472 }
 0x10d   : > { %v581_v24 = vsel %vm569_vm2, %v564_v61, %v473_v8 }
 0x10e   : > { %v598_v4 = vsel %vm586_vm3, %v581_v24, %v527_v47  ;;  %v531_v20 = vpop.permute.xlu2 %530 }
 0x10f   : > { %v865_v42 = vrot.slane %v598_v4, 1 }
 0x111   : > { %v770_v9 = vpop.permute.xlu1 %769  ;;  %v866_v11 = vsel %vm359_vm0, %v864_v7, %v865_v42 }
 0x112   : > { %1380 = vmatmul.msk.f32.gmra.mxu1 %vm605_vm4, %v866_v11  ;;  %1446 = vmatmul.msk.f32.gmra.mxu3 %vm605_vm4, %v866_v11 }
 0x113   : > { %1363 = vmatmul.msk.f32.gmra.mxu0 %vm605_vm4, %v598_v4  ;;  %v1054_v43 = vpop.f32.mrf.mxu2  ;;  %1413 = vmatmul.msk.f32.gmra.mxu2 %vm605_vm4, %v598_v4 }
 0x114   : > { %v1055_v5 = vadd.f32 %v2050_v1, %v1054_v43  ;;  %v746_v15 = vpop.permute.xlu0 %745 }
 0x115   : > { %v812_v12 = vsel %vm552_vm1, %v1775_v50, %v746_v15 }
 0x116   : > { %1420 = vst.msk [vmem:[%s2058_s26 + $0x20] sm:$0xff] %vm569_vm2, %v1055_v5  ;;  %v820_v13 = vsel %vm569_vm2, %v812_v12, %v770_v9  ;;  %v796_v34 = vpop.permute.xlu2 %795 }
 0x117   : > { %v828_v25 = vsel %vm586_vm3, %v820_v13, %v794_v55 }
 0x118   : > { %v867_v22 = vrot.slane %v828_v25, 1 }
 0x119   : > { %v427_v21 = vpop.permute.xlu1 %426 }
 0x11a   : > { %v868_v23 = vsel %vm359_vm0, %v865_v42, %v867_v22 }
 0x11b   : > { %1381 = vmatmul.msk.f32.gmra.mxu1 %vm605_vm4, %v868_v23  ;;  %v1057_v2 = vpop.f32.mrf.mxu2  ;;  %1447 = vmatmul.msk.f32.gmra.mxu3 %vm605_vm4, %v868_v23 }
 0x11c   : > { %v1058_v50 = vadd.f32 %v2050_v1, %v1057_v2  ;;  %v425_v27 = vpop.permute.xlu0 %424 }
 0x11d   : > { %v565_v28 = vsel %vm552_vm1, %v1802_v62, %v425_v27  ;;  %v566_v62 = vsel %vm552_vm1, %v1805_v63, %v427_v21 }
 0x11e   : > { %1421 = vst.msk [vmem:[%s2058_s26 + $0x28] sm:$0xff] %vm569_vm2, %v1058_v50  ;;  %v1161_v0 = vpop.f32.mrf.mxu3  ;;  %v582_v29 = vsel %vm569_vm2, %v565_v28, %v475_v3  ;;  %v479_v63 = vpop.permute.xlu2 %478 }
 0x11f   : > { %v1162_v30 = vadd.f32 %v2050_v1, %v1161_v0 }
 0x120   : > { %v671_v31 = vpop.f32.mrf.mxu0 }
 0x121   : > { %1454 = vst.msk [vmem:[%s2058_s26 + $0x30] sm:$0xff] %vm569_vm2, %v1162_v30  ;;  %v672_v35 = vadd.f32 %v2050_v1, %v671_v31  ;;  %v529_v36 = vpop.permute.xlu1 %528 }
 0x122   : > { %v599_v19 = vsel %vm586_vm3, %v582_v29, %v529_v36 }
 0x123   : > { %719 = vst.msk [vmem:[%s2058_s26] sm:$0xff] %vm569_vm2, %v672_v35  ;;  %1364 = vmatmul.msk.f32.gmra.mxu0 %vm605_vm4, %v599_v19  ;;  %1414 = vmatmul.msk.f32.gmra.mxu2 %vm605_vm4, %v599_v19  ;;  %v869_v45 = vrot.slane %v599_v19, 1 }
 0x124   : > { %v477_v39 = vpop.permute.xlu0 %476 }
 0x125   : > { %v583_v6 = vsel %vm569_vm2, %v566_v62, %v477_v39 }
 0x126   : > { %v600_v44 = vsel %vm586_vm3, %v583_v6, %v531_v20  ;;  %v535_v37 = vpop.permute.xlu2 %534 }
 0x127   : > { %v870_v32 = vrot.slane %v600_v44, 1  ;;  %v931_v26 = vpop.f32.mrf.mxu1 }
 0x128   : > { %v932_v46 = vadd.f32 %v2050_v1, %v931_v26  ;;  %v674_v47 = vpop.f32.mrf.mxu0 }
 0x129   : > { %v675_v48 = vadd.f32 %v2050_v1, %v674_v47  ;;  %v772_v14 = vpop.permute.xlu1 %771  ;;  %v871_v33 = vsel %vm359_vm0, %v869_v45, %v870_v32 }
 0x12a   : > { %1386 = vst.msk [vmem:[%s2058_s26 + $0x10] sm:$0xff] %vm569_vm2, %v932_v46  ;;  %1382 = vmatmul.msk.f32.gmra.mxu1 %vm605_vm4, %v871_v33  ;;  %1448 = vmatmul.msk.f32.gmra.mxu3 %vm605_vm4, %v871_v33 }
 0x12b   : > { %720 = vst.msk [vmem:[%s2058_s26 + $0x8] sm:$0xff] %vm569_vm2, %v675_v48  ;;  %1365 = vmatmul.msk.f32.gmra.mxu0 %vm605_vm4, %v600_v44  ;;  %1415 = vmatmul.msk.f32.gmra.mxu2 %vm605_vm4, %v600_v44 }
 0x12c   : > { %v748_v49 = vpop.permute.xlu0 %747 }
 0x12d   : > { %v813_v51 = vsel %vm552_vm1, %v1823_v16, %v748_v49 }
 0x12e   : > { %v821_v52 = vsel %vm569_vm2, %v813_v51, %v772_v14  ;;  %v798_v15 = vpop.permute.xlu2 %797 }
 0x12f   : > { %v829_v53 = vsel %vm586_vm3, %v821_v52, %v796_v34 }
 0x130   : > { %v872_v10 = vrot.slane %v829_v53, 1  ;;  %v677_v54 = vpop.f32.mrf.mxu0 }
 0x131   : > { %v678_v55 = vadd.f32 %v2050_v1, %v677_v54  ;;  %v431_v56 = vpop.permute.xlu1 %430 }
 0x132   : > { %v873_v58 = vsel %vm359_vm0, %v870_v32, %v872_v10 }
 0x133   : > { %721 = vst.msk [vmem:[%s2058_s26 + $0x40] sm:$0xff] %vm569_vm2, %v678_v55  ;;  %1383 = vmatmul.msk.f32.gmra.mxu1 %vm605_vm4, %v873_v58  ;;  %1449 = vmatmul.msk.f32.gmra.mxu3 %vm605_vm4, %v873_v58 }
 0x134   : > { %v429_v16 = vpop.permute.xlu0 %428 }
 0x135   : > { %v567_v59 = vsel %vm552_vm1, %v1863_v40, %v429_v16  ;;  %v568_v40 = vsel %vm552_vm1, %v1866_v41, %v431_v56 }
 0x136   : > { %v1164_v60 = vpop.f32.mrf.mxu3  ;;  %v584_v3 = vsel %vm569_vm2, %v567_v59, %v479_v63  ;;  %v1005_v29 = vpop.permute.xlu2 %1004 }
 0x137   : > { %v1165_v61 = vadd.f32 %v2050_v1, %v1164_v60 }
 0x138   : > { %v680_v8 = vpop.f32.mrf.mxu0 }
 0x139   : > { %1455 = vst.msk [vmem:[%s2058_s26 + $0x38] sm:$0xff] %vm569_vm2, %v1165_v61  ;;  %v681_v24 = vadd.f32 %v2050_v1, %v680_v8  ;;  %v533_v4 = vpop.permute.xlu1 %532 }
 0x13a   : > { %v601_v7 = vsel %vm586_vm3, %v584_v3, %v533_v4 }
 0x13b   : > { %722 = vst.msk [vmem:[%s2058_s26 + $0x48] sm:$0xff] %vm569_vm2, %v681_v24  ;;  %1366 = vmatmul.msk.f32.gmra.mxu0 %vm605_vm4, %v601_v7  ;;  %v934_v42 = vpop.f32.mrf.mxu1  ;;  %1416 = vmatmul.msk.f32.gmra.mxu2 %vm605_vm4, %v601_v7  ;;  %v874_v12 = vrot.slane %v601_v7, 1 }
 0x13c   : > { %v935_v9 = vadd.f32 %v2050_v1, %v934_v42  ;;  %v481_v11 = vpop.permute.xlu0 %480 }
 0x13d   : > { %v585_v43 = vsel %vm569_vm2, %v568_v40, %v481_v11 }
 0x13e   : > { %1387 = vst.msk [vmem:[%s2058_s26 + $0x18] sm:$0xff] %vm569_vm2, %v935_v9  ;;  %v602_v5 = vsel %vm586_vm3, %v585_v43, %v535_v37  ;;  %v1019_v14 = vpop.permute.xlu2 %1018 }
 0x13f   : > { %v875_v13 = vrot.slane %v602_v5, 1 }
 0x140   : > { %v683_v20 = vpop.f32.mrf.mxu0 }
 0x141   : > { %v684_v25 = vadd.f32 %v2050_v1, %v683_v20  ;;  %v774_v22 = vpop.permute.xlu1 %773  ;;  %v876_v21 = vsel %vm359_vm0, %v874_v12, %v875_v13 }
 0x142   : > { %1384 = vmatmul.msk.f32.gmra.mxu1 %vm605_vm4, %v876_v21  ;;  %1450 = vmatmul.msk.f32.gmra.mxu3 %vm605_vm4, %v876_v21 }
 0x143   : > { %723 = vst.msk [vmem:[%s2058_s26 + $0x80] sm:$0xff] %vm569_vm2, %v684_v25  ;;  %1367 = vmatmul.msk.f32.gmra.mxu0 %vm605_vm4, %v602_v5  ;;  %v937_v41 = vpop.f32.mrf.mxu1  ;;  %1417 = vmatmul.msk.f32.gmra.mxu2 %vm605_vm4, %v602_v5 }
 0x144   : > { %v938_v23 = vadd.f32 %v2050_v1, %v937_v41  ;;  %v750_v2 = vpop.permute.xlu0 %749 }
 0x145   : > { %v814_v50 = vsel %vm552_vm1, %v1885_v57, %v750_v2 }
 0x146   : > { %1388 = vst.msk [vmem:[%s2058_s26 + $0x50] sm:$0xff] %vm569_vm2, %v938_v23  ;;  %v822_v27 = vsel %vm569_vm2, %v814_v50, %v774_v22  ;;  %v1060_v28 = vpop.f32.mrf.mxu2  ;;  %v1126_v61 = vpop.permute.xlu2 %1125 }
 0x147   : > { %v830_v0 = vsel %vm586_vm3, %v822_v27, %v798_v15  ;;  %v1061_v30 = vadd.f32 %v2050_v1, %v1060_v28 }
 0x148   : > { %v877_v31 = vrot.slane %v830_v0, 1  ;;  %v686_v34 = vpop.f32.mrf.mxu0 }
 0x149   : > { %1422 = vst.msk [vmem:[%s2058_s26 + $0x60] sm:$0xff] %vm569_vm2, %v1061_v30  ;;  %v687_v35 = vadd.f32 %v2050_v1, %v686_v34  ;;  %v999_v36 = vpop.permute.xlu1 %998 }
 0x14a   : > { %v878_v57 = vsel %vm359_vm0, %v875_v13, %v877_v31 }
 0x14b   : > { %724 = vst.msk [vmem:[%s2058_s26 + $0x88] sm:$0xff] %vm569_vm2, %v687_v35  ;;  %v940_v19 = vpop.f32.mrf.mxu1  ;;  %1385 = vmatmul.msk.f32.gmra.mxu1 %vm605_vm4, %v878_v57  ;;  %1451 = vmatmul.msk.f32.gmra.mxu3 %vm605_vm4, %v878_v57 }
 0x14c   : > { %v941_v62 = vadd.f32 %v2050_v1, %v940_v19  ;;  %v997_v39 = vpop.permute.xlu0 %996 }
 0x14d   : > { %v1167_v6 = vpop.f32.mrf.mxu3  ;;  %v1022_v44 = vsel %vm552_vm1, %v1920_v17, %v997_v39  ;;  %v1023_v17 = vsel %vm552_vm1, %v1923_v18, %v999_v36 }
 0x14e   : > { %1389 = vst.msk [vmem:[%s2058_s26 + $0x58] sm:$0xff] %vm569_vm2, %v941_v62  ;;  %v1168_v45 = vadd.f32 %v2050_v1, %v1167_v6  ;;  %v1063_v32 = vpop.f32.mrf.mxu2  ;;  %v1024_v46 = vsel %vm569_vm2, %v1022_v44, %v1005_v29 }
 0x14f   : > { %v1064_v26 = vadd.f32 %v2050_v1, %v1063_v32 }
 0x150   : > { %1456 = vst.msk [vmem:[%s2058_s26 + $0x70] sm:$0xff] %vm569_vm2, %v1168_v45 }
 0x151   : > { %1423 = vst.msk [vmem:[%s2058_s26 + $0x68] sm:$0xff] %vm569_vm2, %v1064_v26  ;;  %v1017_v47 = vpop.permute.xlu1 %1016 }
 0x152   : > { %v1026_v48 = vsel %vm586_vm3, %v1024_v46, %v1017_v47 }
 0x153   : > { %v943_v33 = vpop.f32.mrf.mxu1  ;;  %1418 = vmatmul.msk.f32.gmra.mxu2 %vm605_vm4, %v1026_v48  ;;  %v1132_v10 = vrot.slane %v1026_v48, 1 }
 0x154   : > { %v944_v63 = vadd.f32 %v2050_v1, %v943_v33  ;;  %v1007_v49 = vpop.permute.xlu0 %1006 }
 0x155   : > { %v1025_v51 = vsel %vm569_vm2, %v1023_v17, %v1007_v49 }
 0x156   : > { %1390 = vst.msk [vmem:[%s2058_s26 + $0x90] sm:$0xff] %vm569_vm2, %v944_v63  ;;  %v1027_v52 = vsel %vm586_vm3, %v1025_v51, %v1019_v14  ;;  %v1170_v53 = vpop.f32.mrf.mxu3 }
 0x157   : > { %v1133_v54 = vrot.slane %v1027_v52, 1  ;;  %v1171_v55 = vadd.f32 %v2050_v1, %v1170_v53 }
 0x158   : > { %v689_v56 = vpop.f32.mrf.mxu0 }
 0x159   : > { %1457 = vst.msk [vmem:[%s2058_s26 + $0x78] sm:$0xff] %vm569_vm2, %v1171_v55  ;;  %v690_v18 = vadd.f32 %v2050_v1, %v689_v56  ;;  %v1134_v58 = vsel %vm359_vm0, %v1132_v10, %v1133_v54  ;;  %v1123_v37 = vpop.permute.xlu1 %1122 }
 0x15a   : > { %1452 = vmatmul.msk.f32.gmra.mxu3 %vm605_vm4, %v1134_v58 }
 0x15b   : > { %725 = vst.msk [vmem:[%s2058_s26 + $0xc0] sm:$0xff] %vm569_vm2, %v690_v18  ;;  %v946_v16 = vpop.f32.mrf.mxu1  ;;  %1419 = vmatmul.msk.f32.gmra.mxu2 %vm605_vm4, %v1027_v52 }
 0x15c   : > { %v947_v59 = vadd.f32 %v2050_v1, %v946_v16  ;;  %v1120_v60 = vpop.permute.xlu0 %1119 }
 0x15d   : > { %v1128_v8 = vsel %vm552_vm1, %v1947_v38, %v1120_v60 }
 0x15e   : > { %1391 = vst.msk [vmem:[%s2058_s26 + $0x98] sm:$0xff] %vm569_vm2, %v947_v59  ;;  %v1129_v3 = vsel %vm569_vm2, %v1128_v8, %v1123_v37  ;;  %v1066_v24 = vpop.f32.mrf.mxu2 }
 0x15f   : > { %v1130_v4 = vsel %vm586_vm3, %v1129_v3, %v1126_v61  ;;  %v1067_v7 = vadd.f32 %v2050_v1, %v1066_v24 }
 0x160   : > { %v1135_v42 = vrot.slane %v1130_v4, 1  ;;  %v692_v40 = vpop.f32.mrf.mxu0 }
 0x161   : > { %1424 = vst.msk [vmem:[%s2058_s26 + $0xa0] sm:$0xff] %vm569_vm2, %v1067_v7  ;;  %v693_v9 = vadd.f32 %v2050_v1, %v692_v40 }
 0x162   : > { %v1136_v38 = vsel %vm359_vm0, %v1133_v54, %v1135_v42 }
 0x163   : > { %726 = vst.msk [vmem:[%s2058_s26 + $0xc8] sm:$0xff] %vm569_vm2, %v693_v9  ;;  %v949_v11 = vpop.f32.mrf.mxu1  ;;  %1453 = vmatmul.msk.f32.gmra.mxu3 %vm605_vm4, %v1136_v38 }
 0x164   : > { %v950_v43 = vadd.f32 %v2050_v1, %v949_v11 }
 0x165   : > { %v1173_v5 = vpop.f32.mrf.mxu3 }
 0x166   : > { %1392 = vst.msk [vmem:[%s2058_s26 + $0xd0] sm:$0xff] %vm569_vm2, %v950_v43  ;;  %v1174_v15 = vadd.f32 %v2050_v1, %v1173_v5  ;;  %v1069_v12 = vpop.f32.mrf.mxu2 }
 0x167   : > { %v1070_v13 = vadd.f32 %v2050_v1, %v1069_v12 }
 0x168   : > { %1458 = vst.msk [vmem:[%s2058_s26 + $0xb0] sm:$0xff] %vm569_vm2, %v1174_v15 }
 0x169   : > { %1425 = vst.msk [vmem:[%s2058_s26 + $0xa8] sm:$0xff] %vm569_vm2, %v1070_v13 }
 0x16b   : > { %v952_v20 = vpop.f32.mrf.mxu1 }
 0x16c   : > { %v953_v25 = vadd.f32 %v2050_v1, %v952_v20 }
 0x16e   : > { %1393 = vst.msk [vmem:[%s2058_s26 + $0xd8] sm:$0xff] %vm569_vm2, %v953_v25  ;;  %v1176_v22 = vpop.f32.mrf.mxu3 }
 0x16f   : > { %v1177_v21 = vadd.f32 %v2050_v1, %v1176_v22 }
 0x170   : > { %v695_v41 = vpop.f32.mrf.mxu0 }
 0x171   : > { %1459 = vst.msk [vmem:[%s2058_s26 + $0xb8] sm:$0xff] %vm569_vm2, %v1177_v21  ;;  %v696_v23 = vadd.f32 %v2050_v1, %v695_v41 }
 0x173   : > { %727 = vst.msk [vmem:[%s2058_s26 + $0x100] sm:$0xff] %vm569_vm2, %v696_v23 }
 0x176   : > { %v1072_v2 = vpop.f32.mrf.mxu2 }
 0x177   : > { %v1073_v50 = vadd.f32 %v2050_v1, %v1072_v2  ;;  %v955_v27 = vpop.f32.mrf.mxu1 }
 0x178   : > { %v956_v28 = vadd.f32 %v2050_v1, %v955_v27  ;;  %v698_v0 = vpop.f32.mrf.mxu0 }
 0x179   : > { %1426 = vst.msk [vmem:[%s2058_s26 + $0xe0] sm:$0xff] %vm569_vm2, %v1073_v50  ;;  %v699_v30 = vadd.f32 %v2050_v1, %v698_v0 }
 0x17a   : > { %1394 = vst.msk [vmem:[%s2058_s26 + $0x110] sm:$0xff] %vm569_vm2, %v956_v28 }
 0x17b   : > { %728 = vst.msk [vmem:[%s2058_s26 + $0x108] sm:$0xff] %vm569_vm2, %v699_v30 }
 0x17d   : > { %v1179_v31 = vpop.f32.mrf.mxu3 }
 0x17e   : > { %v1180_v34 = vadd.f32 %v2050_v1, %v1179_v31  ;;  %v1075_v29 = vpop.f32.mrf.mxu2 }
 0x17f   : > { %v1076_v35 = vadd.f32 %v2050_v1, %v1075_v29 }
 0x180   : > { %1460 = vst.msk [vmem:[%s2058_s26 + $0xf0] sm:$0xff] %vm569_vm2, %v1180_v34  ;;  %v958_v36 = vpop.f32.mrf.mxu1 }
 0x181   : > { %1427 = vst.msk [vmem:[%s2058_s26 + $0xe8] sm:$0xff] %vm569_vm2, %v1076_v35  ;;  %v959_v57 = vadd.f32 %v2050_v1, %v958_v36 }
 0x183   : > { %1395 = vst.msk [vmem:[%s2058_s26 + $0x118] sm:$0xff] %vm569_vm2, %v959_v57 }
 0x186   : > { %v1182_v19 = vpop.f32.mrf.mxu3 }
 0x187   : > { %v1183_v62 = vadd.f32 %v2050_v1, %v1182_v19 }
 0x188   : > { %v701_v39 = vpop.f32.mrf.mxu0 }
 0x189   : > { %1461 = vst.msk [vmem:[%s2058_s26 + $0xf8] sm:$0xff] %vm569_vm2, %v1183_v62  ;;  %v702_v6 = vadd.f32 %v2050_v1, %v701_v39 }
 0x18b   : > { %729 = vst.msk [vmem:[%s2058_s26 + $0x140] sm:$0xff] %vm569_vm2, %v702_v6 }
 0x18e   : > { %v1078_v44 = vpop.f32.mrf.mxu2 }
 0x18f   : > { %v1079_v45 = vadd.f32 %v2050_v1, %v1078_v44  ;;  %v961_v32 = vpop.f32.mrf.mxu1 }
 0x190   : > { %v962_v26 = vadd.f32 %v2050_v1, %v961_v32  ;;  %v704_v46 = vpop.f32.mrf.mxu0 }
 0x191   : > { %1428 = vst.msk [vmem:[%s2058_s26 + $0x120] sm:$0xff] %vm569_vm2, %v1079_v45  ;;  %v705_v47 = vadd.f32 %v2050_v1, %v704_v46 }
 0x192   : > { %1396 = vst.msk [vmem:[%s2058_s26 + $0x150] sm:$0xff] %vm569_vm2, %v962_v26 }
 0x193   : > { %730 = vst.msk [vmem:[%s2058_s26 + $0x148] sm:$0xff] %vm569_vm2, %v705_v47 }
 0x195   : > { %v1185_v48 = vpop.f32.mrf.mxu3 }
 0x196   : > { %v1186_v14 = vadd.f32 %v2050_v1, %v1185_v48  ;;  %v1081_v33 = vpop.f32.mrf.mxu2 }
 0x197   : > { %v1082_v17 = vadd.f32 %v2050_v1, %v1081_v33 }
 0x198   : > { %1462 = vst.msk [vmem:[%s2058_s26 + $0x130] sm:$0xff] %vm569_vm2, %v1186_v14  ;;  %v964_v63 = vpop.f32.mrf.mxu1 }
 0x199   : > { %1429 = vst.msk [vmem:[%s2058_s26 + $0x128] sm:$0xff] %vm569_vm2, %v1082_v17  ;;  %v965_v49 = vadd.f32 %v2050_v1, %v964_v63 }
 0x19b   : > { %1397 = vst.msk [vmem:[%s2058_s26 + $0x158] sm:$0xff] %vm569_vm2, %v965_v49 }
 0x19e   : > { %v1188_v51 = vpop.f32.mrf.mxu3 }
 0x19f   : > { %v1189_v52 = vadd.f32 %v2050_v1, %v1188_v51 }
 0x1a0   : > { %v707_v53 = vpop.f32.mrf.mxu0 }
 0x1a1   : > { %1463 = vst.msk [vmem:[%s2058_s26 + $0x138] sm:$0xff] %vm569_vm2, %v1189_v52  ;;  %v708_v10 = vadd.f32 %v2050_v1, %v707_v53 }
 0x1a3   : > { %731 = vst.msk [vmem:[%s2058_s26 + $0x180] sm:$0xff] %vm569_vm2, %v708_v10 }
 0x1a6   : > { %v1084_v54 = vpop.f32.mrf.mxu2 }
 0x1a7   : > { %v1085_v55 = vadd.f32 %v2050_v1, %v1084_v54  ;;  %v967_v56 = vpop.f32.mrf.mxu1 }
 0x1a8   : > { %v968_v18 = vadd.f32 %v2050_v1, %v967_v56  ;;  %v710_v58 = vpop.f32.mrf.mxu0 }
 0x1a9   : > { %1430 = vst.msk [vmem:[%s2058_s26 + $0x160] sm:$0xff] %vm569_vm2, %v1085_v55  ;;  %v711_v16 = vadd.f32 %v2050_v1, %v710_v58 }
 0x1aa   : > { %1398 = vst.msk [vmem:[%s2058_s26 + $0x190] sm:$0xff] %vm569_vm2, %v968_v18 }
 0x1ab   : > { %732 = vst.msk [vmem:[%s2058_s26 + $0x188] sm:$0xff] %vm569_vm2, %v711_v16 }
 0x1ad   : > { %v1191_v37 = vpop.f32.mrf.mxu3 }
 0x1ae   : > { %v1192_v59 = vadd.f32 %v2050_v1, %v1191_v37  ;;  %v1087_v60 = vpop.f32.mrf.mxu2 }
 0x1af   : > { %v1088_v61 = vadd.f32 %v2050_v1, %v1087_v60 }
 0x1b0   : > { %1464 = vst.msk [vmem:[%s2058_s26 + $0x170] sm:$0xff] %vm569_vm2, %v1192_v59  ;;  %v970_v8 = vpop.f32.mrf.mxu1 }
 0x1b1   : > { %1431 = vst.msk [vmem:[%s2058_s26 + $0x168] sm:$0xff] %vm569_vm2, %v1088_v61  ;;  %v971_v3 = vadd.f32 %v2050_v1, %v970_v8 }
 0x1b3   : > { %1399 = vst.msk [vmem:[%s2058_s26 + $0x198] sm:$0xff] %vm569_vm2, %v971_v3 }
 0x1b6   : > { %v1194_v24 = vpop.f32.mrf.mxu3 }
 0x1b7   : > { %v1195_v4 = vadd.f32 %v2050_v1, %v1194_v24 }
 0x1b8   : > { %v713_v7 = vpop.f32.mrf.mxu0 }
 0x1b9   : > { %1465 = vst.msk [vmem:[%s2058_s26 + $0x178] sm:$0xff] %vm569_vm2, %v1195_v4  ;;  %v714_v42 = vadd.f32 %v2050_v1, %v713_v7 }
 0x1bb   : > { %733 = vst.msk [vmem:[%s2058_s26 + $0x1c0] sm:$0xff] %vm569_vm2, %v714_v42 }
 0x1be   : > { %v1090_v40 = vpop.f32.mrf.mxu2 }
 0x1bf   : > { %v1091_v9 = vadd.f32 %v2050_v1, %v1090_v40  ;;  %v973_v38 = vpop.f32.mrf.mxu1 }
 0x1c0   : > { %v974_v11 = vadd.f32 %v2050_v1, %v973_v38  ;;  %v716_v43 = vpop.f32.mrf.mxu0 }
 0x1c1   : > { %1432 = vst.msk [vmem:[%s2058_s26 + $0x1a0] sm:$0xff] %vm569_vm2, %v1091_v9  ;;  %v717_v5 = vadd.f32 %v2050_v1, %v716_v43 }
 0x1c2   : > { %1400 = vst.msk [vmem:[%s2058_s26 + $0x1d0] sm:$0xff] %vm569_vm2, %v974_v11 }
 0x1c3   : > { %734 = vst.msk [vmem:[%s2058_s26 + $0x1c8] sm:$0xff] %vm569_vm2, %v717_v5 }
 0x1c5   : > { %v1197_v15 = vpop.f32.mrf.mxu3 }
 0x1c6   : > { %v1198_v12 = vadd.f32 %v2050_v1, %v1197_v15  ;;  %v1093_v13 = vpop.f32.mrf.mxu2 }
 0x1c7   : > { %v1094_v20 = vadd.f32 %v2050_v1, %v1093_v13 }
 0x1c8   : > { %1466 = vst.msk [vmem:[%s2058_s26 + $0x1b0] sm:$0xff] %vm569_vm2, %v1198_v12  ;;  %v976_v25 = vpop.f32.mrf.mxu1 }
 0x1c9   : > { %1433 = vst.msk [vmem:[%s2058_s26 + $0x1a8] sm:$0xff] %vm569_vm2, %v1094_v20  ;;  %v977_v22 = vadd.f32 %v2050_v1, %v976_v25 }
 0x1cb   : > { %1401 = vst.msk [vmem:[%s2058_s26 + $0x1d8] sm:$0xff] %vm569_vm2, %v977_v22 }
 0x1ce   : > { %v1200_v21 = vpop.f32.mrf.mxu3 }
 0x1cf   : > { %v1201_v41 = vadd.f32 %v2050_v1, %v1200_v21 }
 0x1d1   : > { %1467 = vst.msk [vmem:[%s2058_s26 + $0x1b8] sm:$0xff] %vm569_vm2, %v1201_v41 }
 0x1d6   : > { %v1096_v23 = vpop.f32.mrf.mxu2 }
 0x1d7   : > { %v1097_v2 = vadd.f32 %v2050_v1, %v1096_v23 }
 0x1d9   : > { %1434 = vst.msk [vmem:[%s2058_s26 + $0x1e0] sm:$0xff] %vm569_vm2, %v1097_v2 }
 0x1dd   : > { %v1203_v50 = vpop.f32.mrf.mxu3 }
 0x1de   : > { %v1204_v27 = vadd.f32 %v2050_v1, %v1203_v50  ;;  %v1099_v28 = vpop.f32.mrf.mxu2 }
 0x1df   : > { %v1100_v0 = vadd.f32 %v2050_v1, %v1099_v28 }
 0x1e0   : > { %1468 = vst.msk [vmem:[%s2058_s26 + $0x1f0] sm:$0xff] %vm569_vm2, %v1204_v27 }
 0x1e1   : > { %1435 = vst.msk [vmem:[%s2058_s26 + $0x1e8] sm:$0xff] %vm569_vm2, %v1100_v0 }
 0x1e6   : > { %v1206_v30 = vpop.f32.mrf.mxu3 }
 0x1e7   : > { %v1207_v31 = vadd.f32 %v2050_v1, %v1206_v30 }
 0x1e9   : > { %1469 = vst.msk [vmem:[%s2058_s26 + $0x1f8] sm:$0xff] %vm569_vm2, %v1207_v31 }
 0x1ea PF: > { %s14_s19 = sadd.s32 1, %s1557_s19   ;;  %s2343_s15 = smov %s1549_s17 }
 0x1eb   : > { %p11_p9 = scmp.ge.s32.totalorder %s14_s19, 6   ;;  %s2344_s16 = smov %s1553_s18 }
 0x1ec   : > { %s2345_s17 = smov %s2348_s20  ;;  %s2346_s18 = smov %s2352_s21 }
 0x1ed   :  { %13 = sbr.rel (!%p11_p9) target bundleno = 3 (0x3), region = 75 }

</bundles_post_ra>
